<compile_context>
chip_gen: v6e
topology: v6e:2x2x1
jax: 0.10.0
libtpu: 0.0.40
codegen_flags: <defaults>
</compile_context>

<pallas_src>
import math

import jax
import jax.numpy as jnp
from jax import lax
from jax.experimental import pallas as pl
from jax.experimental.pallas import tpu as pltpu


def _vmem():
    return pl.BlockSpec(memory_space=pltpu.MemorySpace.VMEM)


def _round_up(x, m):
    return (x + m - 1) // m * m


def _pad_to(a, axis, size):
    if a.shape[axis] == size:
        return a
    pads = [(0, 0)] * a.ndim
    pads[axis] = (0, size - a.shape[axis])
    return jnp.pad(a, pads)


def _vmem_budget_bytes():
    """Generation-aware VMEM cap (~75% of physical; 48 MiB on v7x, 96 on v6e)."""
    try:
        cap = int(pltpu.get_tpu_info().vmem_capacity_bytes)
    except Exception:
        cap = 64 << 20          # conservative: v7x physical VMEM per TensorCore
    return max(24 << 20, min(cap * 3 // 4, 112 << 20))


def _pick_time_chunk(T, per_step_bytes, fixed_bytes, budget, target):
    """Largest divisor of T (<= target) whose VMEM estimate fits the budget."""
    best = 1
    for tc in range(1, min(T, target) + 1):
        if T % tc == 0 and fixed_bytes + tc * per_step_bytes <= budget:
            best = tc
    return best


# ----------------------------------------------------------------------------
# Kernels
# ----------------------------------------------------------------------------
def enc_proj_first_kernel(x_ref, wih_ref, b_ref, gi_ref):
    """First encoder layer: gi = x @ W_ih + (b_ih + b_hh folded for r,z)."""
    gi_ref[0] = (jnp.dot(x_ref[...], wih_ref[0],
                         preferred_element_type=jnp.float32)
                 + b_ref[0]).astype(gi_ref.dtype)


def enc_proj_deep_kernel(y_ref, wtop_ref, wbot_ref, b_ref, gi_ref):
    """Deeper encoder layers: gi = y_f @ W_top + y_b @ W_bot + bias."""
    acc = jnp.dot(y_ref[0], wtop_ref[0], preferred_element_type=jnp.float32)
    acc = acc + jnp.dot(y_ref[1], wbot_ref[0],
                        preferred_element_type=jnp.float32)
    gi_ref[0] = (acc + b_ref[0]).astype(gi_ref.dtype)


def bigru_recurrent_kernel(gi_ref, whh_ref, bn_ref, y_ref, hout_ref, h_scr):
    """One GRU direction over one time chunk.

    grid = (direction d in {0:fwd, 1:bwd}, chunk i).  d is "parallel" (v7x
    megacore runs the two directions on separate TensorCores); the chunk axis
    is "arbitrary" with the hidden state carried in VMEM scratch.  gi blocks
    are precomputed input projections (gate order [r, z, n], r/z biases
    folded); the index_map already delivers the bwd direction's chunks in
    reverse order, the in-chunk step index is reversed here.
    """
    d = pl.program_id(0)
    i = pl.program_id(1)
    Bp, P = h_scr.shape
    rows = gi_ref.shape[1]
    tc = rows // Bp

    @pl.when(i == 0)
    def _init():
        h_scr[...] = jnp.zeros_like(h_scr)

    bn = jnp.broadcast_to(bn_ref[0], (Bp, P))          # b_hh for the n gate

    def step(tt, h):
        t_loc = tt + d * (tc - 1 - 2 * tt)             # fwd: tt ; bwd: tc-1-tt
        r0 = pl.multiple_of(t_loc * Bp, Bp)            # sublane-aligned rows
        gh = jnp.dot(h.astype(jnp.bfloat16), whh_ref[0],
                     preferred_element_type=jnp.float32)          # (Bp, 3P)
        gi = gi_ref[0, pl.ds(r0, Bp), :].astype(jnp.float32)      # (Bp, 3P)
        r = jax.nn.sigmoid(gi[:, 0:P] + gh[:, 0:P])
        z = jax.nn.sigmoid(gi[:, P:2 * P] + gh[:, P:2 * P])
        n = jnp.tanh(gi[:, 2 * P:3 * P] + r * (gh[:, 2 * P:3 * P] + bn))
        h_new = (1.0 - z) * n + z * h
        y_ref[0, pl.ds(r0, Bp), :] = h_new.astype(y_ref.dtype)
        return h_new

    h_final = lax.fori_loop(0, tc, step, h_scr[...])
    h_scr[...] = h_final
    hout_ref[0] = h_final


def key_linear_kernel(y_ref, w_ref, b_ref, o_ref):
    """(y_f + y_b) @ W_key + b, fused, gridded/parallel over time blocks."""
    s = y_ref[0] + y_ref[1]
    o_ref[...] = (jnp.dot(s, w_ref[...], preferred_element_type=jnp.float32)
                  + b_ref[...]).astype(o_ref.dtype)


def decoder_kernel(lat_ref, h0_ref, encin_ref, enck_ref,
                   wihe_ref, gibias_ref, wprev_ref, whhd_ref, bhhn_ref,
                   wq_ref, bq_ref, woc_ref, woh_ref, bo_ref,
                   out_ref, hN_ref, gi_scr):
    """gru2 decode loop + batched attention, fused.

    lat/h0 : (Bp, P) f32      encin : (T_out*Bp, E) bf16 (time-major, flat)
    enck   : (Bp, S, P) bf16  (keyed encoder output, batch-major)
    wprev/whhd : (P, 3P) bf16 ; woc/woh : (P, P) bf16
    out    : (T_out*Bp, P) f32 ; hN : (Bp, P) f32 ; gi_scr : (T_out*Bp,3P) bf16
    """
    Bp, P = h0_ref.shape
    TB = out_ref.shape[0]
    T_out = TB // Bp

    # Hoisted encoder_input projection for all steps (r/z biases folded).
    gi_scr[...] = (jnp.dot(encin_ref[...], wihe_ref[...],
                           preferred_element_type=jnp.float32)
                   + gibias_ref[...]).astype(gi_scr.dtype)

    bq_b = jnp.broadcast_to(bq_ref[...], (Bp, P))
    bo_b = jnp.broadcast_to(bo_ref[...], (Bp, P))
    bn_b = jnp.broadcast_to(bhhn_ref[...], (Bp, P))

    def gru_step(prev, h, gi):
        gp = jnp.dot(prev.astype(jnp.bfloat16), wprev_ref[...],
                     preferred_element_type=jnp.float32)          # (Bp, 3P)
        gh = jnp.dot(h.astype(jnp.bfloat16), whhd_ref[...],
                     preferred_element_type=jnp.float32)          # (Bp, 3P)
        r = jax.nn.sigmoid(gp[:, 0:P] + gh[:, 0:P] + gi[:, 0:P])
        z = jax.nn.sigmoid(gp[:, P:2 * P] + gh[:, P:2 * P] + gi[:, P:2 * P])
        n = jnp.tanh(gp[:, 2 * P:3 * P] + gi[:, 2 * P:3 * P]
                     + r * (gh[:, 2 * P:3 * P] + bn_b))
        return (1.0 - z) * n + z * h

    # t = 0: raw gru2 output (no attention), matching the reference code.
    h1 = gru_step(lat_ref[...], h0_ref[...],
                  gi_scr[0:Bp, :].astype(jnp.float32))
    out_ref[0:Bp, :] = h1

    def step(t, carry):
        h, prev = carry
        r0 = pl.multiple_of(t * Bp, Bp)
        gi = gi_scr[pl.ds(r0, Bp), :].astype(jnp.float32)
        h_new = gru_step(prev, h, gi)
        # Batched attention on the MXU (one einsum per product, no per-b loop).
        # TODO(synk): for very long encoder sequences on v7x, stream enck over
        # S (flash-attention style online softmax) instead of keeping it whole.
        q = (jnp.dot(h_new.astype(jnp.bfloat16), wq_ref[...],
                     preferred_element_type=jnp.float32) + bq_b)          # (Bp,P)
        ek = enck_ref[...]                                                # (Bp,S,P)
        q3 = q.astype(jnp.bfloat16).reshape(Bp, 1, P)
        s = jnp.einsum('bqp,bsp->bqs', q3, ek,
                       preferred_element_type=jnp.float32)                # (Bp,1,S)
        s = s - jnp.max(s, axis=-1, keepdims=True)
        pw = jnp.exp(s)
        pw = pw / jnp.sum(pw, axis=-1, keepdims=True)
        ctx = jnp.einsum('bqs,bsp->bqp', pw.astype(jnp.bfloat16), ek,
                         preferred_element_type=jnp.float32).reshape(Bp, P)
        attn_out = jnp.tanh(
            jnp.dot(ctx.astype(jnp.bfloat16), woc_ref[...],
                    preferred_element_type=jnp.float32)
            + jnp.dot(h_new.astype(jnp.bfloat16), woh_ref[...],
                      preferred_element_type=jnp.float32) + bo_b)
        out_ref[pl.ds(r0, Bp), :] = attn_out
        return (h_new, attn_out)

    hN, _ = lax.fori_loop(1, T_out, step, (h1, h1))
    hN_ref[...] = hN


def linear_kernel(x_ref, w_ref, b_ref, y_ref):
    y_ref[...] = (jnp.dot(x_ref[...], w_ref[...],
                          preferred_element_type=jnp.float32) + b_ref[...])


def mlp3_kernel(x_ref, w1_ref, b1_ref, w2_ref, b2_ref, w3_ref, b3_ref, y_ref):
    h = jnp.dot(x_ref[...], w1_ref[...],
                preferred_element_type=jnp.float32) + b1_ref[...]
    h = jnp.dot(h, w2_ref[...], preferred_element_type=jnp.float32) + b2_ref[...]
    y_ref[...] = jnp.dot(h, w3_ref[...],
                         preferred_element_type=jnp.float32) + b3_ref[...]


# ----------------------------------------------------------------------------
# Weight preparation (lane-aligned gate blocks, per-direction stacking, bf16)
# ----------------------------------------------------------------------------
def _gate_pad_cols(w, H, P):
    """(..., 3H) -> (..., 3P) with each gate block zero-padded to width P."""
    return jnp.concatenate(
        [_pad_to(w[..., g * H:(g + 1) * H], -1, P) for g in range(3)], axis=-1)


def _prep_encoder_layer(lp, H, P, first):
    if first:
        wih = jnp.stack([_gate_pad_cols(lp["wih_f"], H, P),
                         _gate_pad_cols(lp["wih_b"], H, P)], 0
                        ).astype(jnp.bfloat16)                      # (2, I, 3P)
        wtop = wbot = None
    else:
        def split_rows(w):
            wg = _gate_pad_cols(w, H, P)                            # (2H, 3P)
            return _pad_to(wg[:H], 0, P), _pad_to(wg[H:], 0, P)     # (P, 3P) x2
        tf, bf_ = split_rows(lp["wih_f"])
        tb, bb_ = split_rows(lp["wih_b"])
        wtop = jnp.stack([tf, tb], 0).astype(jnp.bfloat16)          # (2, P, 3P)
        wbot = jnp.stack([bf_, bb_], 0).astype(jnp.bfloat16)
        wih = None

    def prep_whh(w):
        return _pad_to(_gate_pad_cols(w, H, P), 0, P)               # (P, 3P)
    whh = jnp.stack([prep_whh(lp["whh_f"]), prep_whh(lp["whh_b"])], 0
                    ).astype(jnp.bfloat16)                          # (2, P, 3P)

    def prep_bias(bih, bhh):
        br = bih[0:H] + bhh[0:H]
        bz = bih[H:2 * H] + bhh[H:2 * H]
        bn = bih[2 * H:3 * H]
        return jnp.concatenate([_pad_to(br, 0, P), _pad_to(bz, 0, P),
                                _pad_to(bn, 0, P)]).reshape(1, 3 * P)
    bias = jnp.stack([prep_bias(lp["bih_f"], lp["bhh_f"]),
                      prep_bias(lp["bih_b"], lp["bhh_b"])], 0)       # (2,1,3P)
    bn = jnp.stack([_pad_to(lp["bhh_f"][2 * H:3 * H], 0, P).reshape(1, P),
                    _pad_to(lp["bhh_b"][2 * H:3 * H], 0, P).reshape(1, P)], 0)
    return dict(wih=wih, wtop=wtop, wbot=wbot, whh=whh, bias=bias, bn=bn)


def _prep_decoder_weights(p, H, Hd, P):
    def pad_sq(w):
        return _pad_to(_pad_to(w, -1, P), 0, P)

    wih = p["gru2_wih"]                                  # (Hd + E, 3Hd)
    wprev = _pad_to(_gate_pad_cols(wih[:Hd], Hd, P), 0, P).astype(jnp.bfloat16)
    wihe = _gate_pad_cols(wih[Hd:], Hd, P).astype(jnp.bfloat16)       # (E, 3P)
    whhd = _pad_to(_gate_pad_cols(p["gru2_whh"], Hd, P), 0, P
                   ).astype(jnp.bfloat16)                             # (P, 3P)

    bih, bhh = p["gru2_bih"], p["gru2_bhh"]
    gibias = jnp.concatenate(
        [_pad_to(bih[0:Hd] + bhh[0:Hd], 0, P),
         _pad_to(bih[Hd:2 * Hd] + bhh[Hd:2 * Hd], 0, P),
         _pad_to(bih[2 * Hd:3 * Hd], 0, P)]).reshape(1, 3 * P)
    bhhn = _pad_to(bhh[2 * Hd:3 * Hd], 0, P).reshape(1, P)

    wo = p["attn_wo"]                                    # (H + Hd, Hd)
    return dict(
        wihe=wihe, gibias=gibias, wprev=wprev, whhd=whhd, bhhn=bhhn,
        wq=pad_sq(p["attn_wq"]).astype(jnp.bfloat16),
        bq=_pad_to(p["attn_bq"], 0, P).reshape(1, P),
        woc=pad_sq(wo[:H]).astype(jnp.bfloat16),
        woh=pad_sq(wo[H:]).astype(jnp.bfloat16),
        bo=_pad_to(p["attn_bo"], 0, P).reshape(1, P),
        key_w=pad_sq(p["key_w"]).astype(jnp.bfloat16),
        key_b=_pad_to(p["key_b"], 0, P).reshape(1, P))


# ----------------------------------------------------------------------------
# Pallas-call wrappers
# ----------------------------------------------------------------------------
# NOTE: constant-index weight blocks are still double-buffered by the default
# pipeline; the chunk pickers below account for 2 copies in their VMEM budget.

def run_enc_proj_first(x_flat, wih, bias, Bp, P, budget):
    R, I = x_flat.shape
    T = R // Bp
    fixed = 2 * (I * 3 * P * 2) + 2 * (3 * P * 4)
    per_t = 2 * (Bp * I * 2 + Bp * 3 * P * 2)
    tc = _pick_time_chunk(T, per_t, fixed, budget, target=256)
    rb, nb = tc * Bp, T // tc
    return pl.pallas_call(
        enc_proj_first_kernel,
        out_shape=jax.ShapeDtypeStruct((2, R, 3 * P), jnp.bfloat16),
        grid=(2, nb),
        in_specs=[pl.BlockSpec((rb, I), lambda d, j: (j, 0)),
                  pl.BlockSpec((1, I, 3 * P), lambda d, j: (d, 0, 0)),
                  pl.BlockSpec((1, 1, 3 * P), lambda d, j: (d, 0, 0))],
        out_specs=pl.BlockSpec((1, rb, 3 * P), lambda d, j: (d, j, 0)),
        compiler_params=pltpu.CompilerParams(
            dimension_semantics=("parallel", "parallel"),
            vmem_limit_bytes=budget),
    )(x_flat, wih, bias)


def run_enc_proj_deep(y, wtop, wbot, bias, Bp, P, budget):
    R = y.shape[1]
    T = R // Bp
    fixed = 2 * 2 * (P * 3 * P * 2) + 2 * (3 * P * 4)
    per_t = 2 * (2 * Bp * P * 2 + Bp * 3 * P * 2)
    tc = _pick_time_chunk(T, per_t, fixed, budget, target=256)
    rb, nb = tc * Bp, T // tc
    return pl.pallas_call(
        enc_proj_deep_kernel,
        out_shape=jax.ShapeDtypeStruct((2, R, 3 * P), jnp.bfloat16),
        grid=(2, nb),
        in_specs=[pl.BlockSpec((2, rb, P), lambda d, j: (0, j, 0)),
                  pl.BlockSpec((1, P, 3 * P), lambda d, j: (d, 0, 0)),
                  pl.BlockSpec((1, P, 3 * P), lambda d, j: (d, 0, 0)),
                  pl.BlockSpec((1, 1, 3 * P), lambda d, j: (d, 0, 0))],
        out_specs=pl.BlockSpec((1, rb, 3 * P), lambda d, j: (d, j, 0)),
        compiler_params=pltpu.CompilerParams(
            dimension_semantics=("parallel", "parallel"),
            vmem_limit_bytes=budget),
    )(y, wtop, wbot, bias)


def run_bigru_recurrent(gi, whh, bn, Bp, P, budget):
    R = gi.shape[1]
    T = R // Bp
    fixed = (2 * (P * 3 * P * 2)            # whh block, double-buffered
             + 2 * (P * 4)                  # bn block
             + 2 * (Bp * P * 4)             # hout block
             + Bp * P * 4)                  # hidden scratch
    per_t = 2 * (Bp * 3 * P * 2 + Bp * P * 2)   # gi + y blocks, bf16, 2 bufs
    tc = _pick_time_chunk(T, per_t, fixed, budget, target=256)
    rb, nc = tc * Bp, T // tc

    def blk_map(d, i):                       # bwd direction visits chunks reversed
        return (d, i + d * (nc - 1 - 2 * i), 0)

    y, hout = pl.pallas_call(
        bigru_recurrent_kernel,
        out_shape=(jax.ShapeDtypeStruct((2, R, P), jnp.bfloat16),
                   jax.ShapeDtypeStruct((2, Bp, P), jnp.float32)),
        grid=(2, nc),
        in_specs=[pl.BlockSpec((1, rb, 3 * P), blk_map),
                  pl.BlockSpec((1, P, 3 * P), lambda d, i: (d, 0, 0)),
                  pl.BlockSpec((1, 1, P), lambda d, i: (d, 0, 0))],
        out_specs=(pl.BlockSpec((1, rb, P), blk_map),
                   pl.BlockSpec((1, Bp, P), lambda d, i: (d, 0, 0))),
        scratch_shapes=[pltpu.VMEM((Bp, P), jnp.float32)],
        compiler_params=pltpu.CompilerParams(
            dimension_semantics=("parallel", "arbitrary"),
            vmem_limit_bytes=budget),
    )(gi, whh, bn)
    return y, hout


def run_key_linear(y, key_w, key_b, Bp, P, budget):
    R = y.shape[1]
    T = R // Bp
    fixed = 2 * (P * P * 2) + 2 * (P * 4)
    per_t = 2 * (2 * Bp * P * 2 + Bp * P * 2)
    tc = _pick_time_chunk(T, per_t, fixed, budget, target=512)
    rb, nb = tc * Bp, T // tc
    return pl.pallas_call(
        key_linear_kernel,
        out_shape=jax.ShapeDtypeStruct((R, P), jnp.bfloat16),
        grid=(nb,),
        in_specs=[pl.BlockSpec((2, rb, P), lambda j: (0, j, 0)),
                  pl.BlockSpec((P, P), lambda j: (0, 0)),
                  pl.BlockSpec((1, P), lambda j: (0, 0))],
        out_specs=pl.BlockSpec((rb, P), lambda j: (j, 0)),
        compiler_params=pltpu.CompilerParams(
            dimension_semantics=("parallel",),
            vmem_limit_bytes=budget),
    )(y, key_w, key_b)


def run_decoder(latency, h0, enc_in_flat, enck, dw, Bp, budget):
    TB, _ = enc_in_flat.shape
    P = h0.shape[-1]
    out_flat, hN = pl.pallas_call(
        decoder_kernel,
        out_shape=(jax.ShapeDtypeStruct((TB, P), jnp.float32),
                   jax.ShapeDtypeStruct((Bp, P), jnp.float32)),
        in_specs=[_vmem() for _ in range(14)],
        out_specs=(_vmem(), _vmem()),
        scratch_shapes=[pltpu.VMEM((TB, 3 * P), jnp.bfloat16)],
        compiler_params=pltpu.CompilerParams(vmem_limit_bytes=budget),
    )(latency, h0, enc_in_flat, enck,
      dw["wihe"], dw["gibias"], dw["wprev"], dw["whhd"], dw["bhhn"],
      dw["wq"], dw["bq"], dw["woc"], dw["woh"], dw["bo"])
    return out_flat, hN


def run_linear(x, w, b):
    return pl.pallas_call(
        linear_kernel,
        out_shape=jax.ShapeDtypeStruct((x.shape[0], w.shape[1]), jnp.float32),
        in_specs=[_vmem() for _ in range(3)],
        out_specs=_vmem(),
    )(x, w, b.reshape(1, -1))


def run_head(feat2, w1, b1, w2, b2, w3, b3, budget):
    """One fused (B*Hd, 3T) -> (B*Hd, T) matmul chain (lane-padded input)."""
    R0, K = feat2.shape
    Rp = _round_up(R0, 8)
    Kp = _round_up(K, 128)
    xp = jnp.pad(feat2, ((0, Rp - R0), (0, Kp - K)))
    w1p = _pad_to(w1, 0, Kp)
    out = pl.pallas_call(
        mlp3_kernel,
        out_shape=jax.ShapeDtypeStruct((Rp, w3.shape[1]), jnp.float32),
        in_specs=[_vmem() for _ in range(7)],
        out_specs=_vmem(),
        compiler_params=pltpu.CompilerParams(vmem_limit_bytes=budget),
    )(xp, w1p, b1.reshape(1, -1), w2, b2.reshape(1, -1), w3, b3.reshape(1, -1))
    return out[:R0]


# ----------------------------------------------------------------------------
# Model glue (plain JAX): positional encoding, params, forward
# ----------------------------------------------------------------------------
def get_sin_cos_pe(emb_len, emb_dim):
    vel = jnp.arange(emb_dim, dtype=jnp.float32) * 0.5
    t_interval = (1.0 / 2.0 / 1e9) * (1000.0 / emb_len)
    t = jnp.concatenate(
        [jnp.arange(emb_len / 2 - 1, -1, -1, dtype=jnp.float32),
         jnp.arange(emb_len / 2, dtype=jnp.float32)]) * t_interval
    freq = 50.0
    wave_len = 1.0 / freq
    return jnp.cos(vel[None, :] * t[:, None] / wave_len * 2.0 * jnp.pi
                   ).astype(jnp.float32)


def precompute_pos_emb(params, Hd, T_out):
    """Constant, input-independent; compute once and reuse."""
    pos = get_sin_cos_pe(Hd, 20)
    return run_linear(pos, params["emb_w"], params["emb_b"])        # (Hd, T_out)


def _uniform(key, shape, bound):
    return jax.random.uniform(key, shape, dtype=jnp.float32,
                              minval=-bound, maxval=bound)


def build_params(key, cfg):
    keys = iter(jax.random.split(key, 128))
    H = cfg["enc_hidden"]
    Hd = cfg["dec_hidden"]
    T_out = cfg["t_out"]
    p = {}

    bound = 1.0 / math.sqrt(H)
    gru1 = []
    in_dim = cfg["enc_in"]
    for _ in range(cfg["enc_layers"]):
        layer = {}
        for d in ("f", "b"):
            layer[f"wih_{d}"] = _uniform(next(keys), (in_dim, 3 * H), bound)
            layer[f"whh_{d}"] = _uniform(next(keys), (H, 3 * H), bound)
            layer[f"bih_{d}"] = _uniform(next(keys), (3 * H,), bound)
            layer[f"bhh_{d}"] = _uniform(next(keys), (3 * H,), bound)
        gru1.append(layer)
        in_dim = 2 * H
    p["gru1"] = gru1

    bd = 1.0 / math.sqrt(Hd)
    p["gru2_wih"] = _uniform(next(keys), (cfg["dec_in"], 3 * Hd), bd)
    p["gru2_whh"] = _uniform(next(keys), (Hd, 3 * Hd), bd)
    p["gru2_bih"] = _uniform(next(keys), (3 * Hd,), bd)
    p["gru2_bhh"] = _uniform(next(keys), (3 * Hd,), bd)

    bq = 1.0 / math.sqrt(H)
    p["attn_wq"] = _uniform(next(keys), (H, Hd), bq)
    p["attn_bq"] = _uniform(next(keys), (Hd,), bq)
    bo = 1.0 / math.sqrt(H + Hd)
    p["attn_wo"] = _uniform(next(keys), (H + Hd, Hd), bo)
    p["attn_bo"] = _uniform(next(keys), (Hd,), bo)

    bk = 1.0 / math.sqrt(H)
    p["key_w"] = _uniform(next(keys), (H, Hd), bk)
    p["key_b"] = _uniform(next(keys), (Hd,), bk)

    be = 1.0 / math.sqrt(20)
    p["emb_w"] = _uniform(next(keys), (20, T_out), be)
    p["emb_b"] = _uniform(next(keys), (T_out,), be)

    b1 = 1.0 / math.sqrt(3 * T_out)
    p["out1_w"] = _uniform(next(keys), (3 * T_out, 2 * T_out), b1)
    p["out1_b"] = _uniform(next(keys), (2 * T_out,), b1)
    b2 = 1.0 / math.sqrt(2 * T_out)
    p["out2_w"] = _uniform(next(keys), (2 * T_out, T_out), b2)
    p["out2_b"] = _uniform(next(keys), (T_out,), b2)
    b3 = 1.0 / math.sqrt(T_out)
    p["out3_w"] = _uniform(next(keys), (T_out, T_out), b3)
    p["out3_b"] = _uniform(next(keys), (T_out,), b3)
    return p


def cam_gru_forward(params, cfg, x, encoder_input, xcorr_max_idx,
                    output_time_steps, pos_emb=None):
    """Mirrors CAM_GRU.forward. x:(B,T_enc,C) enc_in:(B,T_out,E) xcorr:(B,T_out)."""
    B, T_enc, _ = x.shape
    H = cfg["enc_hidden"]
    Hd = cfg["dec_hidden"]
    L = cfg["enc_layers"]
    assert cfg["dec_layers"] == 1  # TODO(synk): multi-layer decoder GRU not implemented
    assert H == Hd  # required implicitly by the original module's weight shapes
    P = _round_up(H, 128)
    T_out = output_time_steps
    Bp = _round_up(B, 8)                      # sublane-aligned batch padding
    budget = _vmem_budget_bytes()

    # ---- batch padding + time-major flattening (padded rows discarded later)
    xp = _pad_to(x, 0, Bp)
    encp = _pad_to(encoder_input, 0, Bp)
    x_flat = jnp.transpose(xp, (1, 0, 2)).reshape(T_enc * Bp, -1
                                                  ).astype(jnp.bfloat16)

    # ---- gru1 encoder: parallel gi projection + direction-parallel recurrence
    y = h_out = None
    for l in range(L):
        w = _prep_encoder_layer(params["gru1"][l], H, P, first=(l == 0))
        if l == 0:
            gi = run_enc_proj_first(x_flat, w["wih"], w["bias"], Bp, P, budget)
        else:
            gi = run_enc_proj_deep(y, w["wtop"], w["wbot"], w["bias"],
                                   Bp, P, budget)
        y, h_out = run_bigru_recurrent(gi, w["whh"], w["bn"], Bp, P, budget)

    last = (T_enc - 1) * Bp
    latency = (y[0, last:last + Bp, :].astype(jnp.float32)
               + y[1, last:last + Bp, :].astype(jnp.float32))         # (Bp, P)
    h_dec0 = h_out[1]                                # backward final hidden

    # ---- key linear fused with direction-sum (gridded, parallel) ----
    dec_w = _prep_decoder_weights(params, H, Hd, P)
    enck_flat = run_key_linear(y, dec_w["key_w"], dec_w["key_b"], Bp, P, budget)
    enck = jnp.transpose(enck_flat.reshape(T_enc, Bp, P), (1, 0, 2))  # (Bp,S,P)

    # ---- fused gru2 + batched-attention decode loop ----
    enc_in_flat = jnp.transpose(encp, (1, 0, 2)).reshape(T_out * Bp, -1
                                                         ).astype(jnp.bfloat16)
    out_flat, h_final = run_decoder(latency, h_dec0, enc_in_flat, enck,
                                    dec_w, Bp, budget)
    hn_out = h_final[None, :B, :Hd]                                   # (1,B,Hd)

    out_bht = jnp.transpose(out_flat.reshape(T_out, Bp, P)[:, :B, :Hd],
                            (1, 2, 0))                                # (B,Hd,T)

    # ---- positional info + xcorr features ----
    if pos_emb is None:
        pos_emb = precompute_pos_emb(params, Hd, T_out)
    pos_b = jnp.broadcast_to(pos_emb[None], (B, Hd, T_out))
    xcorr_b = jnp.broadcast_to(xcorr_max_idx[:, None, :].astype(jnp.float32),
                               (B, Hd, T_out))
    feat = jnp.concatenate([out_bht, xcorr_b, pos_b], axis=2)         # (B,Hd,3T)

    # ---- fused 3-linear output head (one flat matmul chain) ----
    head = run_head(feat.reshape(B * Hd, 3 * T_out),
                    params["out1_w"], params["out1_b"],
                    params["out2_w"], params["out2_b"],
                    params["out3_w"], params["out3_b"], budget)       # (B*Hd,T)
    result = jnp.transpose(head.reshape(B, Hd, T_out), (0, 2, 1))
    return result, hn_out


# ----------------------------------------------------------------------------
if __name__ == "__main__":
    cfg = dict(enc_in=4, enc_hidden=32, enc_layers=1,
               dec_hidden=32, dec_layers=1,
               enc_feat=8, t_enc=8, t_out=16)
    cfg["dec_in"] = cfg["dec_hidden"] + cfg["enc_feat"]
    B = 2

    root = jax.random.PRNGKey(0)
    k_par, k_x, k_e, k_c = jax.random.split(root, 4)
    params = build_params(k_par, cfg)

    x = jax.random.normal(k_x, (B, cfg["t_enc"], cfg["enc_in"]), jnp.float32)
    encoder_input = jax.random.normal(k_e, (B, cfg["t_out"], cfg["enc_feat"]),
                                      jnp.float32)
    xcorr_max_idx = jax.random.normal(k_c, (B, cfg["t_out"]), jnp.float32)

    # Positional-embedding linear is input-independent: compute once, reuse.
    pos_emb = precompute_pos_emb(params, cfg["dec_hidden"], cfg["t_out"])

    out, hn = cam_gru_forward(params, cfg, x, encoder_input, xcorr_max_idx,
                              cfg["t_out"], pos_emb=pos_emb)
    jax.block_until_ready((out, hn))

    assert out.shape == (B, cfg["t_out"], cfg["dec_hidden"]), out.shape
    assert hn.shape == (cfg["dec_layers"], B, cfg["dec_hidden"]), hn.shape
    assert bool(jnp.all(jnp.isfinite(out))) and bool(jnp.all(jnp.isfinite(hn)))
    print("KERNEL_OK")
</pallas_src>

<mosaic_0001>
module attributes {stable_mosaic.version = 11 : i64} {
  func.func @linear_kernel(%arg0: memref<32x20xf32, #tpu.memory_space<vmem>>, %arg1: memref<20x16xf32, #tpu.memory_space<vmem>>, %arg2: memref<1x16xf32, #tpu.memory_space<vmem>>, %arg3: memref<32x16xf32, #tpu.memory_space<vmem>>) attributes {dimension_semantics = [], scalar_prefetch = 0 : i64, scratch_operands = 0 : i64, tpu.core_type = #tpu.core_type<tc>} {
    %c0 = arith.constant 0 : index
    %c0_0 = arith.constant 0 : index
    %0 = vector.load %arg0[%c0, %c0_0] : memref<32x20xf32, #tpu.memory_space<vmem>>, vector<32x20xf32>
    %c0_1 = arith.constant 0 : index
    %c0_2 = arith.constant 0 : index
    %1 = vector.load %arg1[%c0_1, %c0_2] : memref<20x16xf32, #tpu.memory_space<vmem>>, vector<20x16xf32>
    %cst = arith.constant dense<0.000000e+00> : vector<32x16xf32>
    %2 = tpu.matmul %0, %1, %cst {dimension_numbers = #tpu.dot_dimension_numbers<[1], [0], [0], [1], [0, 0, 1, 1], [], []>} : vector<32x20xf32>, vector<20x16xf32>, vector<32x16xf32> -> vector<32x16xf32>
    %c0_3 = arith.constant 0 : index
    %c0_4 = arith.constant 0 : index
    %3 = vector.load %arg2[%c0_3, %c0_4] : memref<1x16xf32, #tpu.memory_space<vmem>>, vector<1x16xf32>
    %4 = vector.broadcast %3 : vector<1x16xf32> to vector<32x16xf32>
    %5 = arith.addf %2, %4 : vector<32x16xf32>
    %c0_5 = arith.constant 0 : index
    %c0_6 = arith.constant 0 : index
    %6 = vector.load %arg3[%c0_5, %c0_6] : memref<32x16xf32, #tpu.memory_space<vmem>>, vector<32x16xf32>
    tpu.vector_store %arg3[%c0_5, %c0_6], %5 {strides = array<i32>} : memref<32x16xf32, #tpu.memory_space<vmem>>, vector<32x16xf32>,
    return
  }
}

</mosaic_0001>

<bundles_post_ra>
// kernel: tpu_custom_call.1
= control target key start
LH: loop header
LB: loop body
LE: loop exit
PB: predicated region body
PF: predicated region fallthrough
CT: control target
= control target key end

     0   :  { %vm41_vm0 = vcmask 1043456   ;;  %vm28_vm1 = vcmask 162816   ;;  %vm130_vm2 = vcmask 130048   ;;  %s226_s1 = inlined_call_operand.vmem [shape: f32[20,16], index: 1, kind: input, shape index: {}]   ;;  %s227_s0 = inlined_call_operand.vmem [shape: f32[32,20], index: 0, kind: input, shape index: {}]   ;;  %s228_s2 = inlined_call_operand.vmem [shape: f32[1,16], index: 2, kind: input, shape index: {}]   ;;  %s229_s3 = inlined_call_operand.vmem [shape: f32[32,16], index: 3, kind: output, shape index: {}]  }
   0x1   :  { %v20_v0 = vld [vmem:[%s226_s1 + $0x10] sm:$0xf]  ;;  %v19_v1 = vld [vmem:[%s226_s1 + $0x8] sm:$0xff]  ;;  %v18_v2 = vld [vmem:[%s226_s1] sm:$0xff] }
   0x2   :  { %152 = vmatprep.subr.msk.mxu0 %vm41_vm0, %v20_v0  ;;  %164 = vmatprep.subr.msk.mxu1 %vm41_vm0, %v20_v0  ;;  %v14_v3 = vld [vmem:[%s227_s0] sm:$0xff]  ;;  %v16_v4 = vld [vmem:[%s227_s0 + $0x10] sm:$0xff]  ;;  %v15_v5 = vld [vmem:[%s227_s0 + $0x8] sm:$0xff] }
   0x3   :  { %153 = vmatpush3.msk.msra.mxu0 %vm41_vm0, %v20_v0  ;;  %167 = vmatpush3.msk.msra.mxu1 %vm41_vm0, %v20_v0  ;;  %v17_v6 = vld [vmem:[%s227_s0 + $0x18] sm:$0xff]  ;;  %v139_v7 = vld [vmem:[%s228_s2] ss:$0 sm:$0xff] }
   0x4   :  { %154 = vmatprep.subr.mxu0 %v19_v1  ;;  %165 = vmatprep.subr.mxu1 %v19_v1 }
   0x5   :  { %155 = vmatpush3.msra.mxu0 %v19_v1  ;;  %168 = vmatpush3.msra.mxu1 %v19_v1 }
   0x6   :  { %156 = vmatprep.subr.mxu0 %v18_v2  ;;  %166 = vmatprep.subr.mxu1 %v18_v2 }
   0x7   :  { %157 = vmatpush3.msra.mxu0 %v18_v2  ;;  %169 = vmatpush3.msra.mxu1 %v18_v2 }
   0x8   :  { %158 = vmatprep.mubr.msk.f32.mxu0 %vm28_vm1, %v14_v3  ;;  %161 = vmatprep.mubr.msk.f32.mxu1 %vm28_vm1, %v16_v4 }
   0x9   :  { %159 = vmatmul.mubr.msk.f32.vlgmr.msra.gmra.mxu0 %vm28_vm1, %v15_v5  ;;  %162 = vmatmul.mubr.msk.f32.vlgmr.msra.gmra.mxu1 %vm28_vm1, %v17_v6 }
  0xc9   :  { %v160_v8 = vpop.f32.mrf.mxu0  ;;  %v163_v9 = vpop.f32.mrf.mxu1 }
  0xca   :  { %v117_v10 = vadd.f32 %v160_v8, %v139_v7  ;;  %v127_v11 = vadd.f32 %v163_v9, %v139_v7 }
  0xcb   :  { %v111_v12 = vpop.f32.mrf.mxu0  ;;  %v121_v13 = vpop.f32.mrf.mxu1 }
  0xcc   :  { %132 = vst.msk [vmem:[%s229_s3 + $0x8] sm:$0xff] %vm130_vm2, %v117_v10  ;;  %134 = vst.msk [vmem:[%s229_s3 + $0x18] sm:$0xff] %vm130_vm2, %v127_v11  ;;  %v112_v14 = vadd.f32 %v139_v7, %v111_v12  ;;  %v122_v15 = vadd.f32 %v139_v7, %v121_v13 }
  0xce   :  { %131 = vst.msk [vmem:[%s229_s3] sm:$0xff] %vm130_vm2, %v112_v14  ;;  %133 = vst.msk [vmem:[%s229_s3 + $0x10] sm:$0xff] %vm130_vm2, %v122_v15 }

</bundles_post_ra>
